<compile_context>
chip_gen: v7x
topology: tpu7x:2x2x1
jax: 0.10.0
libtpu: 0.0.40
codegen_flags: <defaults>
</compile_context>

<pallas_src>
import jax
import jax.numpy as jnp
from jax.experimental import pallas as pl
from jax.experimental.pallas import tpu as pltpu


# ----------------------- conv1 + bn1 + relu (fused bf16 matmul kernel) ----------------------- #

def _conv_bn_relu_kernel(a_ref, b_ref, shift_ref, o_ref):
    # a_ref: (TM, K) bf16 im2col patches; b_ref: (K, Cout) bf16 weights with BN scale folded in.
    acc = jnp.dot(a_ref[...], b_ref[...], preferred_element_type=jnp.float32)   # MXU, f32 accum
    o_ref[...] = jnp.maximum(acc + shift_ref[...], 0.0).astype(o_ref.dtype)     # BN shift + ReLU


def conv_bn_relu_matmul(patches, w_mat, shift, *, tm=512):
    M, K = patches.shape
    Kw, Cout = w_mat.shape
    assert K == Kw
    tm = min(tm, max(8, ((M + 7) // 8) * 8))      # don't over-pad tiny problems
    Mp = ((M + tm - 1) // tm) * tm
    if Mp != M:
        patches = jnp.pad(patches, ((0, Mp - M), (0, 0)))

    out = pl.pallas_call(
        _conv_bn_relu_kernel,
        out_shape=jax.ShapeDtypeStruct((Mp, Cout), jnp.float32),
        grid_spec=pltpu.PrefetchScalarGridSpec(
            num_scalar_prefetch=0,
            grid=(Mp // tm,),
            in_specs=[
                pl.BlockSpec((tm, K), lambda i: (i, 0)),
                pl.BlockSpec((K, Cout), lambda i: (0, 0)),
                pl.BlockSpec((1, Cout), lambda i: (0, 0)),
            ],
            out_specs=pl.BlockSpec((tm, Cout), lambda i: (i, 0)),
        ),
        compiler_params=pltpu.CompilerParams(
            dimension_semantics=("parallel",),
            vmem_limit_bytes=48 * 1024 * 1024,
        ),
    )(patches, w_mat, shift)
    return out[:M]


# ----------------------- maxpool 3x3 / stride 2 / pad 1 (windowed in-kernel) ----------------------- #

def _maxpool_kernel(x_ref, h_ref, o_ref):
    # x_ref: (1, TP, 2, WH, 2C)  TP pooled rows' worth of padded conv rows, row/col parity packed:
    #        x_ref[0, i, p, m, :C] == yp[2*(TP*rb + i) + p, 2*m, :],  [..., C:] == column 2*m + 1
    # h_ref: (1, 1, 1, WH, 2C)   halo: the even padded row of the NEXT block (row 2*TP*(rb+1))
    # o_ref: (1, TP, Wp_o, C)
    C = o_ref.shape[-1]
    x = x_ref[0]                          # (TP, 2, WH, 2C)
    t0 = x[:, 0]                          # padded rows 2*i          (TP, WH, 2C)
    t1 = x[:, 1]                          # padded rows 2*i + 1
    halo = h_ref[...][0, 0]               # (1, WH, 2C): padded row 2*TP (first row of next block)
    if t0.shape[0] > 1:
        t2 = jnp.concatenate([t0[1:], halo], axis=0)   # padded rows 2*i + 2
    else:
        t2 = halo
    r = jnp.maximum(jnp.maximum(t0, t1), t2)           # row-pooled, parity still in lanes
    ev = r[:, :, :C]                      # padded cols 2*m          (TP, WH, C)
    od = r[:, :, C:]                      # padded cols 2*m + 1
    out = jnp.maximum(jnp.maximum(ev[:, :-1, :], od[:, :-1, :]), ev[:, 1:, :])  # (TP, Wp_o, C)
    o_ref[...] = out[None].astype(o_ref.dtype)


def maxpool3x3s2(y, *, tp_rows=8):
    # y: (N, Ho, Wo, C) NHWC, ReLU output (>= 0, so zero padding is equivalent to -inf padding).
    N, Ho, Wo, C = y.shape
    Hp_o = (Ho + 2 - 3) // 2 + 1
    Wp_o = (Wo + 2 - 3) // 2 + 1
    TP = min(tp_rows, Hp_o)                       # pooled rows per grid step
    Hp_o_pad = ((Hp_o + TP - 1) // TP) * TP
    n_rb = Hp_o_pad // TP
    WH = Wp_o + 1                                 # width of the column-parity-packed view
    He = 2 * (Hp_o_pad + TP)                      # multiple of 2*TP, with room for the halo reads

    yp = jnp.pad(y, ((0, 0), (1, He - 1 - Ho), (1, 2 * WH - 1 - Wo), (0, 0)))
    # pack row parity into its own dim and column parity into the lane dim (pure metadata reshape):
    # last dim becomes 2*C = 128 -> lane-dense blocks, no strided slices needed in the kernel.
    ypr = yp.reshape(N, He // 2, 2, WH, 2 * C)

    out = pl.pallas_call(
        _maxpool_kernel,
        out_shape=jax.ShapeDtypeStruct((N, Hp_o_pad, Wp_o, C), y.dtype),
        grid_spec=pltpu.PrefetchScalarGridSpec(
            num_scalar_prefetch=0,
            grid=(N, n_rb),
            in_specs=[
                # main block: TP pooled rows' worth of padded conv rows
                pl.BlockSpec((1, TP, 2, WH, 2 * C), lambda n, rb: (n, rb, 0, 0, 0)),
                # halo block: the first (even-parity) padded row of the next main block
                pl.BlockSpec((1, 1, 1, WH, 2 * C), lambda n, rb: (n, (rb + 1) * TP, 0, 0, 0)),
            ],
            out_specs=pl.BlockSpec((1, TP, Wp_o, C), lambda n, rb: (n, rb, 0, 0)),
        ),
        compiler_params=pltpu.CompilerParams(
            dimension_semantics=("parallel", "parallel"),
            vmem_limit_bytes=48 * 1024 * 1024,
        ),
    )(ypr, ypr)
    return out[:, :Hp_o]


# ----------------------- wrapper (NCHW in / NCHW out, glue in plain JAX) ----------------------- #

def visible_module_forward(x_nchw, w_oihw, gamma, beta, run_mean, run_var, eps=1e-5):
    N, Cin, H, W = x_nchw.shape
    Cout, Cin_w, KH, KW = w_oihw.shape
    assert Cin == Cin_w and KH == 7 and KW == 7

    # NHWC; bf16 MXU inputs (f32 accumulation) -> halves the im2col HBM traffic.
    x = jnp.transpose(x_nchw, (0, 2, 3, 1)).astype(jnp.bfloat16)

    # ---- conv1: 7x7, stride 2, pad 3 -> im2col (bf16) + fused matmul kernel ----
    Ho = (H + 2 * 3 - 7) // 2 + 1
    Wo = (W + 2 * 3 - 7) // 2 + 1
    xp = jnp.pad(x, ((0, 0), (3, 3), (3, 3), (0, 0)))
    cols = []
    for ky in range(7):
        for kx in range(7):
            cols.append(
                jax.lax.slice(
                    xp,
                    (0, ky, kx, 0),
                    (N, ky + 2 * (Ho - 1) + 1, kx + 2 * (Wo - 1) + 1, Cin),
                    (1, 2, 2, 1),
                )
            )
    patches = jnp.concatenate(cols, axis=-1).reshape(N * Ho * Wo, KH * KW * Cin)

    # fold inference BatchNorm: scale goes into the weights, shift stays in the kernel epilogue
    inv_std = 1.0 / jnp.sqrt(run_var.astype(jnp.float32) + eps)
    scale = gamma.astype(jnp.float32) * inv_std                                        # (Cout,)
    shift = (beta.astype(jnp.float32) - run_mean.astype(jnp.float32) * scale).reshape(1, Cout)
    w_mat = jnp.transpose(w_oihw, (2, 3, 1, 0)).reshape(KH * KW * Cin, Cout).astype(jnp.float32)
    w_mat = (w_mat * scale[None, :]).astype(jnp.bfloat16)

    y = conv_bn_relu_matmul(patches, w_mat, shift)     # (N*Ho*Wo, Cout) f32
    y = y.reshape(N, Ho, Wo, Cout)                     # NHWC conv+bn+relu output

    # ---- maxpool: 3x3, stride 2, pad 1 (single read of the padded conv output) ----
    pooled = maxpool3x3s2(y)                           # (N, Hp_o, Wp_o, Cout)
    return jnp.transpose(pooled, (0, 3, 1, 2))         # back to NCHW


# ----------------------- pure-JAX reference for verification ----------------------- #

def reference_forward(x_nchw, w_oihw, gamma, beta, run_mean, run_var, eps=1e-5):
    conv = jax.lax.conv_general_dilated(
        x_nchw, w_oihw, window_strides=(2, 2), padding=((3, 3), (3, 3)),
        dimension_numbers=("NCHW", "OIHW", "NCHW"), precision=jax.lax.Precision.HIGHEST,
    )
    inv_std = 1.0 / jnp.sqrt(run_var + eps)
    bn = (conv - run_mean[None, :, None, None]) * (gamma * inv_std)[None, :, None, None] \
         + beta[None, :, None, None]
    act = jnp.maximum(bn, 0.0)
    pooled = jax.lax.reduce_window(
        act, -jnp.inf, jax.lax.max,
        window_dimensions=(1, 1, 3, 3), window_strides=(1, 1, 2, 2),
        padding=((0, 0), (0, 0), (1, 1), (1, 1)),
    )
    return pooled


# ----------------------- main ----------------------- #

if __name__ == "__main__":
    key = jax.random.PRNGKey(0)
    k_w, k_g, k_b, k_m, k_v, k_x = jax.random.split(key, 6)

    N, Cin, H, W = 2, 3, 32, 32      # RGB input, small spatial size
    Cout = 64                        # resnet50 conv1 output channels

    w = jax.random.normal(k_w, (Cout, Cin, 7, 7), jnp.float32) * (2.0 / (Cin * 7 * 7)) ** 0.5
    gamma = jax.random.uniform(k_g, (Cout,), jnp.float32, minval=0.5, maxval=1.5)
    beta = jax.random.normal(k_b, (Cout,), jnp.float32) * 0.1
    run_mean = jax.random.normal(k_m, (Cout,), jnp.float32) * 0.1
    run_var = jax.random.uniform(k_v, (Cout,), jnp.float32, minval=0.5, maxval=1.5)

    x = jax.random.normal(k_x, (N, Cin, H, W), jnp.float32)

    fwd = jax.jit(visible_module_forward)
    out = jax.block_until_ready(fwd(x, w, gamma, beta, run_mean, run_var))
    ref = jax.block_until_ready(reference_forward(x, w, gamma, beta, run_mean, run_var))

    assert out.shape == ref.shape, (out.shape, ref.shape)
    # bf16 MXU inputs (f32 accumulation) -> slightly looser tolerance than the pure-f32 version
    assert jnp.allclose(out, ref, atol=5e-2, rtol=5e-2), float(jnp.max(jnp.abs(out - ref)))

    print("KERNEL_OK")
</pallas_src>

<mosaic_0001>
module attributes {stable_mosaic.version = 11 : i64} {
  func.func @_conv_bn_relu_kernel(%arg0: i32, %arg1: memref<512x147xbf16, #tpu.memory_space<vmem>>, %arg2: memref<147x64xbf16, #tpu.memory_space<vmem>>, %arg3: memref<1x64xf32, #tpu.memory_space<vmem>>, %arg4: memref<512x64xf32, #tpu.memory_space<vmem>>) attributes {dimension_semantics = [#tpu.dimension_semantics<parallel>], iteration_bounds = array<i64: 1>, scalar_prefetch = 0 : i64, scratch_operands = 0 : i64, tpu.core_type = #tpu.core_type<tc>, window_params = [{transform_indices = @transform_0, window_bounds = array<i64: 512, 147>}, {pipeline_mode = #tpu.pipeline_mode<synchronous>, transform_indices = @transform_1, window_bounds = array<i64: 147, 64>}, {pipeline_mode = #tpu.pipeline_mode<synchronous>, transform_indices = @transform_2, window_bounds = array<i64: 1, 64>}, {transform_indices = @transform_3, window_bounds = array<i64: 512, 64>}]} {
    %c0 = arith.constant 0 : index
    %c0_0 = arith.constant 0 : index
    %0 = vector.load %arg1[%c0, %c0_0] : memref<512x147xbf16, #tpu.memory_space<vmem>>, vector<512x147xbf16>
    %c0_1 = arith.constant 0 : index
    %c0_2 = arith.constant 0 : index
    %1 = vector.load %arg2[%c0_1, %c0_2] : memref<147x64xbf16, #tpu.memory_space<vmem>>, vector<147x64xbf16>
    %cst = arith.constant dense<0.000000e+00> : vector<512x64xf32>
    %2 = tpu.matmul %0, %1, %cst {dimension_numbers = #tpu.dot_dimension_numbers<[1], [0], [0], [1], [0, 0, 1, 1], [], []>} : vector<512x147xbf16>, vector<147x64xbf16>, vector<512x64xf32> -> vector<512x64xf32>
    %c0_3 = arith.constant 0 : index
    %c0_4 = arith.constant 0 : index
    %3 = vector.load %arg3[%c0_3, %c0_4] : memref<1x64xf32, #tpu.memory_space<vmem>>, vector<1x64xf32>
    %4 = vector.broadcast %3 : vector<1x64xf32> to vector<512x64xf32>
    %5 = arith.addf %2, %4 : vector<512x64xf32>
    %cst_5 = arith.constant 0.000000e+00 : f32
    %6 = vector.broadcast %cst_5 : f32 to vector<512x64xf32>
    %7 = arith.maximumf %5, %6 : vector<512x64xf32>
    %c0_6 = arith.constant 0 : index
    %c0_7 = arith.constant 0 : index
    %8 = vector.load %arg4[%c0_6, %c0_7] : memref<512x64xf32, #tpu.memory_space<vmem>>, vector<512x64xf32>
    tpu.vector_store %arg4[%c0_6, %c0_7], %7 {strides = array<i32>} : memref<512x64xf32, #tpu.memory_space<vmem>>, vector<512x64xf32>,
    return
  }
  func.func @transform_0(%arg0: i32) -> (i32, i32) {
    %c0_i32 = arith.constant 0 : i32
    %c0_i32_0 = arith.constant 0 : i32
    return %arg0, %c0_i32 : i32, i32
  }
  func.func @transform_1(%arg0: i32) -> (i32, i32) {
    %c0_i32 = arith.constant 0 : i32
    %c0_i32_0 = arith.constant 0 : i32
    %c0_i32_1 = arith.constant 0 : i32
    return %c0_i32, %c0_i32_0 : i32, i32
  }
  func.func @transform_2(%arg0: i32) -> (i32, i32) {
    %c0_i32 = arith.constant 0 : i32
    %c0_i32_0 = arith.constant 0 : i32
    %c0_i32_1 = arith.constant 0 : i32
    return %c0_i32, %c0_i32_0 : i32, i32
  }
  func.func @transform_3(%arg0: i32) -> (i32, i32) {
    %c0_i32 = arith.constant 0 : i32
    %c0_i32_0 = arith.constant 0 : i32
    return %arg0, %c0_i32 : i32, i32
  }
}

module attributes {stable_mosaic.version = 11 : i64} {
  func.func @_maxpool_kernel(%arg0: i32, %arg1: i32, %arg2: memref<1x8x2x9x128xf32, #tpu.memory_space<vmem>>, %arg3: memref<1x1x1x9x128xf32, #tpu.memory_space<vmem>>, %arg4: memref<1x8x8x64xf32, #tpu.memory_space<vmem>>) attributes {dimension_semantics = [#tpu.dimension_semantics<parallel>, #tpu.dimension_semantics<parallel>], iteration_bounds = array<i64: 2, 1>, scalar_prefetch = 0 : i64, scratch_operands = 0 : i64, tpu.core_type = #tpu.core_type<tc>, window_params = [{transform_indices = @transform_0, window_bounds = array<i64: 1, 8, 2, 9, 128>}, {transform_indices = @transform_1, window_bounds = array<i64: 1, 1, 1, 9, 128>}, {transform_indices = @transform_2, window_bounds = array<i64: 1, 8, 8, 64>}]} {
    %c0 = arith.constant 0 : index
    %c0_0 = arith.constant 0 : index
    %c0_1 = arith.constant 0 : index
    %c0_2 = arith.constant 0 : index
    %c0_3 = arith.constant 0 : index
    %0 = vector.load %arg2[%c0, %c0_0, %c0_1, %c0_2, %c0_3] : memref<1x8x2x9x128xf32, #tpu.memory_space<vmem>>, vector<1x8x2x9x128xf32>
    %1 = vector.shape_cast %0 : vector<1x8x2x9x128xf32> to vector<8x2x9x128xf32>
    %2 = vector.extract_strided_slice %1 {offsets = [0, 0, 0, 0], sizes = [8, 1, 9, 128], strides = [1, 1, 1, 1]} : vector<8x2x9x128xf32> to vector<8x1x9x128xf32>
    %3 = vector.shape_cast %2 : vector<8x1x9x128xf32> to vector<8x9x128xf32>
    %4 = vector.extract_strided_slice %1 {offsets = [0, 1, 0, 0], sizes = [8, 1, 9, 128], strides = [1, 1, 1, 1]} : vector<8x2x9x128xf32> to vector<8x1x9x128xf32>
    %5 = vector.shape_cast %4 : vector<8x1x9x128xf32> to vector<8x9x128xf32>
    %c0_4 = arith.constant 0 : index
    %c0_5 = arith.constant 0 : index
    %c0_6 = arith.constant 0 : index
    %c0_7 = arith.constant 0 : index
    %c0_8 = arith.constant 0 : index
    %6 = vector.load %arg3[%c0_4, %c0_5, %c0_6, %c0_7, %c0_8] : memref<1x1x1x9x128xf32, #tpu.memory_space<vmem>>, vector<1x1x1x9x128xf32>
    %7 = vector.shape_cast %6 : vector<1x1x1x9x128xf32> to vector<1x9x128xf32>
    %8 = vector.extract_strided_slice %3 {offsets = [1, 0, 0], sizes = [7, 9, 128], strides = [1, 1, 1]} : vector<8x9x128xf32> to vector<7x9x128xf32>
    %9 = tpu.concatenate %8, %7 in 0 : vector<7x9x128xf32>, vector<1x9x128xf32> -> vector<8x9x128xf32>
    %10 = arith.maximumf %3, %5 : vector<8x9x128xf32>
    %11 = arith.maximumf %10, %9 : vector<8x9x128xf32>
    %12 = vector.extract_strided_slice %11 {offsets = [0, 0, 0], sizes = [8, 9, 64], strides = [1, 1, 1]} : vector<8x9x128xf32> to vector<8x9x64xf32>
    %13 = vector.extract_strided_slice %11 {offsets = [0, 0, 64], sizes = [8, 9, 64], strides = [1, 1, 1]} : vector<8x9x128xf32> to vector<8x9x64xf32>
    %14 = vector.extract_strided_slice %12 {offsets = [0, 0, 0], sizes = [8, 8, 64], strides = [1, 1, 1]} : vector<8x9x64xf32> to vector<8x8x64xf32>
    %15 = vector.extract_strided_slice %13 {offsets = [0, 0, 0], sizes = [8, 8, 64], strides = [1, 1, 1]} : vector<8x9x64xf32> to vector<8x8x64xf32>
    %16 = arith.maximumf %14, %15 : vector<8x8x64xf32>
    %17 = vector.extract_strided_slice %12 {offsets = [0, 1, 0], sizes = [8, 8, 64], strides = [1, 1, 1]} : vector<8x9x64xf32> to vector<8x8x64xf32>
    %18 = arith.maximumf %16, %17 : vector<8x8x64xf32>
    %19 = vector.shape_cast %18 : vector<8x8x64xf32> to vector<1x8x8x64xf32>
    %c0_9 = arith.constant 0 : index
    %c0_10 = arith.constant 0 : index
    %c0_11 = arith.constant 0 : index
    %c0_12 = arith.constant 0 : index
    %20 = vector.load %arg4[%c0_9, %c0_10, %c0_11, %c0_12] : memref<1x8x8x64xf32, #tpu.memory_space<vmem>>, vector<1x8x8x64xf32>
    tpu.vector_store %arg4[%c0_9, %c0_10, %c0_11, %c0_12], %19 {strides = array<i32>} : memref<1x8x8x64xf32, #tpu.memory_space<vmem>>, vector<1x8x8x64xf32>,
    return
  }
  func.func @transform_0(%arg0: i32, %arg1: i32) -> (i32, i32, i32, i32, i32) {
    %c0_i32 = arith.constant 0 : i32
    %c0_i32_0 = arith.constant 0 : i32
    %c0_i32_1 = arith.constant 0 : i32
    %c0_i32_2 = arith.constant 0 : i32
    return %arg0, %arg1, %c0_i32, %c0_i32_0, %c0_i32_1 : i32, i32, i32, i32, i32
  }
  func.func @transform_1(%arg0: i32, %arg1: i32) -> (i32, i32, i32, i32, i32) {
    %c1_i32 = arith.constant 1 : i32
    %0 = arith.addi %arg1, %c1_i32 : i32
    %c8_i32 = arith.constant 8 : i32
    %1 = arith.muli %0, %c8_i32 : i32
    %c0_i32 = arith.constant 0 : i32
    %c0_i32_0 = arith.constant 0 : i32
    %c0_i32_1 = arith.constant 0 : i32
    %c0_i32_2 = arith.constant 0 : i32
    return %arg0, %1, %c0_i32, %c0_i32_0, %c0_i32_1 : i32, i32, i32, i32, i32
  }
  func.func @transform_2(%arg0: i32, %arg1: i32) -> (i32, i32, i32, i32) {
    %c0_i32 = arith.constant 0 : i32
    %c0_i32_0 = arith.constant 0 : i32
    %c0_i32_1 = arith.constant 0 : i32
    return %arg0, %arg1, %c0_i32, %c0_i32_0 : i32, i32, i32, i32
  }
}

</mosaic_0001>

<bundles_post_ra>
// kernel: visible_module_forward.3
= control target key start
LH: loop header
LB: loop body
LE: loop exit
PB: predicated region body
PF: predicated region fallthrough
CT: control target
= control target key end

     0   :  { %7 = vsyncpa [#allocation3], 0  ;;  %s914_s0 = inlined_call_operand.vmem [shape: f32[2,16,2,9,128], index: 0, kind: input, shape index: {}, may-alias: {0,1}]   ;;  %s915_s1 = inlined_call_operand.vmem [shape: f32[2,16,2,9,128], index: 1, kind: input, shape index: {}, may-alias: {0,1}]   ;;  %s916_s2 = inlined_call_operand.hbm [shape: f32[2,8,8,64], index: 2, kind: output, shape index: {}]  }
   0x1   :  { %9 = vsyncpa [#allocation3 + $0x1], 0  ;;  %s684_s9 = smov 0   ;;  %s686_s10 = smov 0  }
   0x2   :  { %s688_s11 = smov 0   ;;  %s690_s12 = smov 0  }
   0x3   :  { %s692_s13 = smov 0   ;;  %s694_s14 = smov 0  }
   0x4 LB: > { %s507_s15 = sadd.s32 4294967295, %s663_s14   ;;  %s508_s16 = sadd.s32 4294967294, %s663_s14   ;;  %s663_s14 = sphi %s694_s14, %s15_s14   ;;  %s659_s13 = sphi %s692_s13, %s923_s13   ;;  %s655_s12 = sphi %s690_s12, %s922_s12   ;;  %s651_s11 = sphi %s688_s11, %s921_s11   ;;  %s647_s10 = sphi %s686_s10, %s920_s10   ;;  %s643_s9 = sphi %s684_s9, %s919_s9  }
   0x5   : > { %s27_s17 = sadd.s32 1, %s659_s13  ;;  %s96_s18 = sadd.s32 1, %s651_s11 }
   0x6   : > { %p29_p0 = scmp.ge.s32.totalorder %s27_s17, 2  ;;  %p106_p1 = scmp.ne.s32.totalorder %s651_s11, %s647_s10 }
   0x7   : > { %p107_p2 = scmp.eq.s32.totalorder %s507_s15, 1  ;;  %p112_p3 = scmp.ne.s32.totalorder %s647_s10, %s643_s9 }
   0x8   : > { %s925_s17 = smov (%p29_p0, %s27_s17), 0  ;;  %p113_p5 = scmp.eq.s32.totalorder %s508_s16, 1 }
   0x9   : > { %p724_p4 = por %p107_p2, %p106_p1  ;;  %s91_s20 = ssub.s32 %s659_s13, %s925_s17 }
   0xa   : > { %p511_p6 = scmp.ge.s32.totalorder %s663_s14, 1  ;;  %p94_p7 = scmp.eq.s32.totalorder %s91_s20, 0 }
   0xb   : > { %p731_p8 = por %p113_p5, %p112_p3  ;;  %p161_p9 = scmp.lt.s32.totalorder %s663_s14, 3 }
   0xc   : > { %s737_s22 = scalar_select %p94_p7, %s651_s11, %s96_s18  }
   0xd   : > { %p162_p10 = pnand %p511_p6, %p161_p9 }
   0xe   : > { %p200_p11 = scmp.lt.s32.totalorder (!%p162_p10), %s655_s12, 1  ;;  %s665_s29 = smov (!%p162_p10), 64   ;;  %vm338_vm0 = vcmask (!%p162_p10), 1046528   ;;  %vm379_vm1 = vcmask (!%p162_p10), 523264  }
   0xf   : > { %165 = sbr.rel (%p162_p10) target bundleno = 179 (0xb3), region = 28  ;;  %s196_s5 = sand.u32 (!%p162_p10), 1, %s647_s10  }
  0x10   : > { %s512_s6 = sshll.u32 (!%p162_p10), %s196_s5, 6  ;;  %s525_s8 = sshll.u32 (!%p162_p10), %s655_s12, 10 }
  0x11   : > { %s824_s7 = scalar_lea.vmem (!%p162_p10), [#allocation2], %s512_s6  ;;  %s858_s20 = scalar_lea.hbm (!%p162_p10), %s916_s2, %s525_s8 }
  0x12   : > { %s404_s15 = sshll.u32 (!%p162_p10), %s824_s7, 4  ;;  %s860_s15 = int_to_ptr.vmem [resolvable:$true] %s404_s15 }
  0x16   : > { %s201_s23 = scalar_select %p200_p11, %s655_s12, 1 }
  0x17   : > { %s868_s12 = scalar_lea.sflag [#allocation3], %s196_s5 }
  0x18   : > { %s522_s24 = sshll.u32 %s201_s23, 9  ;;  %s585_s23 = scalar_lea.vmem %s860_s15, 1024 }
  0x19   : > { %s744_s27 = scalar_lea.vmem %s914_s0, %s522_s24  ;;  %s524_s28 = sadd.s32 256, %s522_s24 }
  0x1a   : > { %v232_v0 = vld [vmem:[%s744_s27 + $0x40] sm:$0xff]  ;;  %v234_v1 = vld [vmem:[%s744_s27 + $0x50] sm:$0xff]  ;;  %v763_v18 = vld [vmem:[%s744_s27 + $0xe8] sm:$0x1]  ;;  %s220_s4 = scalar_lea.vmem %s915_s1, %s524_s28  ;;  %p586_p12 = scmp.ne.s32.totalorder %s860_s15, %s585_s23 }
  0x1b   : > { %v236_v2 = vld [vmem:[%s744_s27 + $0x60] sm:$0xff]  ;;  %v262_v3 = vmax.f32 %v232_v0, %v234_v1  ;;  %v226_v5 = vld [vmem:[%s744_s27 + $0x10] sm:$0xff]  ;;  %v255_v22 = vld [vmem:[%s744_s27 + $0xf8] sm:$0x1]  ;;  %s666_s24 = smov [#allocation2]  }
  0x1c   : > { %v224_v4 = vld [vmem:[%s744_s27] sm:$0xff]  ;;  %v238_v8 = vld [vmem:[%s744_s27 + $0x70] sm:$0xff]  ;;  %v257_v27 = vld [vmem:[%s220_s4 + $0x8] sm:$0x1]  ;;  %v273_v28 = vmax.f32 %v763_v18, %v255_v22  ;;  %p587_p13 = pnand %p586_p12, %p724_p4  ;;  %s589_s25 = sshll.u32 %s666_s24, 4  ;;  %s590_s25 = int_to_ptr.vmem [resolvable:$false] %s589_s25 }
  0x1d   : > { %v228_v6 = vld [vmem:[%s744_s27 + $0x20] sm:$0xff]  ;;  %v258_v7 = vmax.f32 %v224_v4, %v226_v5  ;;  %v230_v10 = vld [vmem:[%s744_s27 + $0x30] sm:$0xff]  ;;  %v755_v11 = vmax.f32 %v262_v3, %v236_v2  ;;  %v264_v12 = vmax.f32 %v236_v2, %v238_v8  ;;  %v233_v38 = vld [vmem:[%s744_s27 + $0x48] sm:$0x1]  ;;  %s591_s26 = scalar_lea.vmem %s590_s25, 2048  ;;  %p592_p1 = scmp.lt.s32.totalorder %s860_s15, %s590_s25 }
  0x1e   : > { %v240_v9 = vld [vmem:[%s744_s27 + $0x80] sm:$0xff]  ;;  %v260_v13 = vmax.f32 %v228_v6, %v230_v10  ;;  %v246_v15 = vld [vmem:[%s744_s27 + $0xb0] sm:$0xff]  ;;  %v780_v30 = vmax.f32 %v273_v28, %v257_v27  ;;  %v235_v39 = vld [vmem:[%s744_s27 + $0x58] sm:$0x1]  ;;  %p588_p0 = pneg %p587_p13  ;;  %p593_p2 = scmp.lt.s32.totalorder %s591_s26, %s585_s23 }
  0x1f   : > { %v244_v14 = vld [vmem:[%s744_s27 + $0xa0] sm:$0xff]  ;;  %v759_v16 = vmax.f32 %v258_v7, %v228_v6  ;;  %v242_v17 = vld [vmem:[%s744_s27 + $0x90] sm:$0xff]  ;;  %302 = vrot.lane.b32.xlu1 %v755_v11, %s665_s29  ;;  %v766_v19 = vmax.f32 %v264_v12, %v240_v9  ;;  %v225_v40 = vld [vmem:[%s744_s27 + $0x8] sm:$0x1]  ;;  %v263_v42 = vmax.f32 %v233_v38, %v235_v39  ;;  %v345_v56 = vrot.slane %v755_v11, 1 }
  0x20   : > { %v248_v20 = vld [vmem:[%s744_s27 + $0xc0] sm:$0xff]  ;;  %v268_v21 = vmax.f32 %v244_v14, %v246_v15  ;;  %v774_v23 = vmax.f32 %v260_v13, %v232_v0  ;;  %v266_v24 = vmax.f32 %v240_v9, %v242_v17  ;;  %v254_v26 = vld [vmem:[%s744_s27 + $0xf0] sm:$0xff]  ;;  %v227_v41 = vld [vmem:[%s744_s27 + $0x18] sm:$0x1]  ;;  %p594_p3 = por %p593_p2, %p592_p1 }
  0x21   : > { %298 = vrot.lane.b32.xlu0 %v759_v16, %s665_s29  ;;  %v252_v25 = vld [vmem:[%s744_s27 + $0xe0] sm:$0xff]  ;;  %v250_v29 = vld [vmem:[%s744_s27 + $0xd0] sm:$0xff]  ;;  %v237_v43 = vld [vmem:[%s744_s27 + $0x68] sm:$0x1]  ;;  %v259_v44 = vmax.f32 %v225_v40, %v227_v41  ;;  %v339_v62 = vrot.slane %v759_v16, 1  ;;  %v348_v2 = vrot.slane %v766_v19, 1 }
  0x22   : > { %v783_v31 = vmax.f32 %v268_v21, %v248_v20  ;;  %v272_v32 = vmax.f32 %v252_v25, %v254_v26  ;;  %v786_v33 = vmax.f32 %v266_v24, %v244_v14  ;;  %v256_v34 = vld [vmem:[%s220_s4] sm:$0xff]  ;;  %v270_v35 = vmax.f32 %v248_v20, %v250_v29  ;;  %v239_v45 = vld [vmem:[%s744_s27 + $0x78] sm:$0x1]  ;;  %v229_v47 = vld [vmem:[%s744_s27 + $0x28] sm:$0x1]  ;;  %p595_p5 = pnand %p594_p3, %p588_p0 }
  0x23   : > { %304 = vrot.lane.b32.xlu1 %v766_v19, %s665_s29  ;;  %v231_v46 = vld [vmem:[%s744_s27 + $0x38] sm:$0x1]  ;;  %v279_v48 = vmax.f32 %v263_v42, %v237_v43  ;;  %v265_v49 = vmax.f32 %v237_v43, %v239_v45  ;;  %v275_v51 = vmax.f32 %v259_v44, %v229_v47  ;;  %v241_v52 = vld [vmem:[%s744_s27 + $0x88] sm:$0x1]  ;;  %v342_v3 = vrot.slane %v774_v23, 1 }
  0x24   : > { %v789_v36 = vmax.f32 %v272_v32, %v256_v34  ;;  %v792_v37 = vmax.f32 %v270_v35, %v252_v25  ;;  %v261_v50 = vmax.f32 %v229_v47, %v231_v46  ;;  %v245_v53 = vld [vmem:[%s744_s27 + $0xa8] sm:$0x1]  ;;  %v247_v54 = vld [vmem:[%s744_s27 + $0xb8] sm:$0x1]  ;;  %v354_v20 = vrot.slane %v783_v31, 1 }
  0x25   : > { %300 = vrot.lane.b32.xlu0 %v774_v23, %s665_s29  ;;  %v243_v55 = vld [vmem:[%s744_s27 + $0x98] sm:$0x1]  ;;  %v346_v57 = vrot.slane %v279_v48, 1  ;;  %v281_v58 = vmax.f32 %v265_v49, %v241_v52  ;;  %v269_v60 = vmax.f32 %v245_v53, %v247_v54  ;;  %v340_v61 = vrot.slane %v275_v51, 1  ;;  %v249_v63 = vld [vmem:[%s744_s27 + $0xc8] sm:$0x1] }
  0x26   : > { %v277_v59 = vmax.f32 %v261_v50, %v233_v38  ;;  %v267_v0 = vmax.f32 %v241_v52, %v243_v55  ;;  %v251_v1 = vld [vmem:[%s744_s27 + $0xd8] sm:$0x1]  ;;  %v351_v26 = vrot.slane %v786_v33, 1  ;;  %v361_v40 = vrot.slane %v780_v30, 1 }
  0x27   : > { %308 = vrot.lane.b32.xlu1 %v783_v31, %s665_s29  ;;  %v347_v5 = vsel %vm338_vm0, %v345_v56, %v346_v57  ;;  %v349_v6 = vrot.slane %v281_v58, 1  ;;  %v285_v8 = vmax.f32 %v269_v60, %v249_v63  ;;  %v341_v12 = vsel %vm338_vm0, %v339_v62, %v340_v61 }
  0x28   : > { %v343_v7 = vrot.slane %v277_v59, 1  ;;  %v283_v13 = vmax.f32 %v267_v0, %v245_v53  ;;  %v271_v14 = vmax.f32 %v249_v63, %v251_v1  ;;  %v357_v42 = vrot.slane %v792_v37, 1 }
  0x29   : > { %306 = vrot.lane.b32.xlu0 %v786_v33, %s665_s29  ;;  %v350_v22 = vsel %vm338_vm0, %v348_v2, %v349_v6  ;;  %v355_v25 = vrot.slane %v285_v8, 1 }
  0x2a   : > { %v352_v28 = vrot.slane %v283_v13, 1  ;;  %v287_v29 = vmax.f32 %v271_v14, %v763_v18 }
  0x2b   : > { %312 = vrot.lane.b32.xlu1 %v789_v36, %s665_s29  ;;  %v356_v38 = vsel %vm338_vm0, %v354_v20, %v355_v25 }
  0x2c   : > { %v353_v41 = vsel %vm338_vm0, %v351_v26, %v352_v28  ;;  %v358_v43 = vrot.slane %v287_v29, 1 }
  0x2d   : > { %310 = vrot.lane.b32.xlu0 %v792_v37, %s665_s29 }
  0x2e   : > { %v359_v48 = vsel %vm338_vm0, %v357_v42, %v358_v43 }
  0x91   : > { %v303_v4 = vpop.permute.xlu1 %302 }
  0x92   : > { %v324_v9 = vmax.f32 %v755_v11, %v303_v4 }
  0x93   : > { %v299_v10 = vpop.permute.xlu0 %298 }
  0x94   : > { %v322_v15 = vmax.f32 %v759_v16, %v299_v10  ;;  %v373_v17 = vmax.f32 %v324_v9, %v347_v5  ;;  %v344_v16 = vsel %vm338_vm0, %v342_v3, %v343_v7 }
  0x95   : > { %v305_v24 = vpop.permute.xlu1 %304 }
  0x96   : > { %v371_v21 = vmax.f32 %v322_v15, %v341_v12  ;;  %382 = vst.msk [vmem:[%s824_s7 + $0x10] sm:$0xff] %vm379_vm1, %v373_v17  ;;  %v325_v11 = vmax.f32 %v766_v19, %v305_v24  ;;  %v360_v19 = vrot.slane %v789_v36, 1 }
  0x97   : > { %v301_v27 = vpop.permute.xlu0 %300 }
  0x98   : > { %380 = vst.msk [vmem:[%s824_s7] sm:$0xff] %vm379_vm1, %v371_v21  ;;  %v323_v32 = vmax.f32 %v774_v23, %v301_v27  ;;  %v374_v34 = vmax.f32 %v325_v11, %v350_v22  ;;  %v362_v30 = vsel %vm338_vm0, %v360_v19, %v361_v40 }
  0x99   : > { %v309_v39 = vpop.permute.xlu1 %308 }
  0x9a   : > { %v372_v35 = vmax.f32 %v323_v32, %v344_v16  ;;  %383 = vst.msk [vmem:[%s824_s7 + $0x18] sm:$0xff] %vm379_vm1, %v374_v34  ;;  %v327_v18 = vmax.f32 %v783_v31, %v309_v39 }
  0x9b   : > { %v307_v23 = vpop.permute.xlu0 %306 }
  0x9c   : > { %381 = vst.msk [vmem:[%s824_s7 + $0x8] sm:$0xff] %vm379_vm1, %v372_v35  ;;  %v326_v44 = vmax.f32 %v786_v33, %v307_v23  ;;  %v376_v45 = vmax.f32 %v327_v18, %v356_v38 }
  0x9d   : > { %v313_v47 = vpop.permute.xlu1 %312 }
  0x9e   : > { %v375_v46 = vmax.f32 %v326_v44, %v353_v41  ;;  %385 = vst.msk [vmem:[%s824_s7 + $0x28] sm:$0xff] %vm379_vm1, %v376_v45  ;;  %v329_v31 = vmax.f32 %v789_v36, %v313_v47 }
  0x9f   : > { %v311_v49 = vpop.permute.xlu0 %310 }
  0xa0   : > { %384 = vst.msk [vmem:[%s824_s7 + $0x20] sm:$0xff] %vm379_vm1, %v375_v46  ;;  %v328_v33 = vmax.f32 %v792_v37, %v311_v49  ;;  %v378_v50 = vmax.f32 %v329_v31, %v362_v30 }
  0xa2   : > { %v377_v51 = vmax.f32 %v328_v33, %v359_v48  ;;  %387 = vst.msk [vmem:[%s824_s7 + $0x38] sm:$0xff] %vm379_vm1, %v378_v50 }
  0xa4   : > { %386 = vst.msk [vmem:[%s824_s7 + $0x30] sm:$0xff] %vm379_vm1, %v377_v51 }
  0xa5   : > { %598 = shalt.err (!%p595_p5)
}
  0xa6   : > { %s599_s27 = scalar_lea.hbm %s858_s20, 1024  ;;  %s603_s30 = scalar_lea.hbm %s916_s2, 2048 }
  0xa7   : > { %p600_p6 = scmp.ne.s32.totalorder %s858_s20, %s599_s27  ;;  %p604_p10 = scmp.lt.u32.totalorder %s858_s20, %s916_s2 }
  0xa8   : > { %p605_p11 = scmp.lt.u32.totalorder %s603_s30, %s599_s27  ;;  %p607_p13 = scmp.lt.u32.totalorder %s599_s27, %s858_s20 }
  0xa9   : > { %p601_p7 = pnand %p600_p6, %p724_p4 }
  0xaa   : > { %p606_p12 = por %p605_p11, %p604_p10 }
  0xab   : > { %p602_p9 = pneg %p601_p7 }
  0xac   : > { %p608_p0 = por %p607_p13, %p606_p12 }
  0xae   : > { %p609_p1 = pnand %p608_p0, %p602_p9 }
  0xb0   : > { %612 = shalt.err (!%p609_p1)
}
  0xb1   : > { %s667_s5 = smov 128   ;;  %s668_s6 = smov 8  }
  0xb2   : > { %527 = dma.vmem_to_hbm [thread:$0]  (%p724_p4), %s860_s15, 1024, %s858_s20, %s868_s12, %s667_s5, %s667_s5, %s668_s6  }
  0xb3 PF: > { %p533_p2 = scmp.ge.s32.totalorder %s663_s14, 2  ;;  %s419_s7 = sand.u32 1, %s643_s9  }
  0xb4   : > { %s420_s8 = scalar_lea.sflag [#allocation3], %s419_s7 }
  0xb5   : > { %p530_p3 = pnand %p533_p2, %p731_p8 }
  0xb7   : > { %638 = dma.done.wait (!%p530_p3), %s420_s8, 1024  }
  0xb8   : > { %640 = vsyncadd (!%p530_p3), %s420_s8, 4294966272  ;;  %s15_s14 = sadd.s32 1, %s663_s14   ;;  %s919_s9 = smov %s647_s10 }
  0xb9   : > { %p12_p5 = scmp.ge.s32.totalorder %s15_s14, 4   ;;  %s920_s10 = smov %s651_s11 }
  0xba   : > { %s921_s11 = smov %s737_s22  ;;  %s922_s12 = smov %s659_s13 }
  0xbb   : > { %s923_s13 = smov %s925_s17  ;;  %14 = sbr.rel (!%p12_p5) target bundleno = 4 (0x4), region = 66 }
  0xc2   :  { %425 = vsyncpa [#allocation3], 1 }
  0xc3   :  { %427 = vsyncpa [#allocation3 + $0x1], 1 }

// kernel: visible_module_forward.2
= control target key start
LH: loop header
LB: loop body
LE: loop exit
PB: predicated region body
PF: predicated region fallthrough
CT: control target
= control target key end

     0   :  { %v1211_v0 = vmov 0   ;;  %vm450_vm0 = vcmask 154624   ;;  %vm547_vm1 = vcmask 1040384   ;;  %vm548_vm2 = vcmask 1041408   ;;  %s1812_s1 = inlined_call_operand.vmem [shape: bf16[147,64], index: 1, kind: input, shape index: {}]   ;;  %s1813_s0 = inlined_call_operand.vmem [shape: bf16[512,147], index: 0, kind: input, shape index: {}]   ;;  %s1814_s2 = inlined_call_operand.vmem [shape: f32[1,64], index: 2, kind: input, shape index: {}]   ;;  %s1815_s3 = inlined_call_operand.vmem [shape: f32[512,64], index: 3, kind: output, shape index: {}]  }
   0x1   :  { %554 = vmatprep.subr.bf16.mxu0 %v1211_v0  ;;  %1083 = vmatprep.subr.bf16.mxu1 %v1211_v0  ;;  %v1105_v1 = vld [vmem:[%s1812_s1] sm:$0xff]   ;;  %v1106_v2 = vld [vmem:[%s1812_s1 + $0x8] sm:$0xff]   ;;  %v1107_v3 = vld [vmem:[%s1812_s1 + $0x10] sm:$0xff]   ;;  %v1212_v11 = vmov 65535   ;;  %vm907_vm3 = vcmask 523264  }
   0x2   :  { %555 = vmatpush1.bf16.msra.mxu0 %v1105_v1  ;;  %1093 = vmatpush1.bf16.msra.mxu1 %v1105_v1  ;;  %v1108_v4 = vld [vmem:[%s1812_s1 + $0x18] sm:$0xff]   ;;  %v1117_v5 = vld [vmem:[%s1813_s0 + $0x4] ss:$8 sps:$4 sm:$0xff]   ;;  %v1111_v9 = vld [vmem:[%s1812_s1 + $0x30] sm:$0xff]   ;;  %v549_v12 = vsel %vm547_vm1, 4294967295, %v1212_v11 }
   0x3   :  { %556 = vmatprep.subr.bf16.mxu0 %v1211_v0  ;;  %1084 = vmatprep.subr.bf16.mxu1 %v1211_v0  ;;  %v1120_v6 = vld [vmem:[%s1813_s0 + $0x104] ss:$8 sps:$4 sm:$0xff]   ;;  %v1112_v10 = vld [vmem:[%s1812_s1 + $0x38] sm:$0xff]   ;;  %v1114_v14 = vld [vmem:[%s1812_s1 + $0x48] ss:$0 sps:$4 sm:$0x33]  }
   0x4   :  { %1051 = vmatprep.mubr.msk.bf16.mxu0 %vm450_vm0, %v1117_v5  ;;  %v1109_v7 = vld [vmem:[%s1812_s1 + $0x20] sm:$0xff]   ;;  %1067 = vmatprep.mubr.msk.bf16.mxu1 %vm450_vm0, %v1120_v6  ;;  %v1110_v8 = vld [vmem:[%s1812_s1 + $0x28] sm:$0xff]   ;;  %v550_v15 = vsel %vm548_vm2, %v549_v12, 0  ;;  %v1121_v19 = vld [vmem:[%s1813_s0 + $0x14] ss:$8 sps:$4 sm:$0xff]  }
   0x5   :  { %v1113_v13 = vld [vmem:[%s1812_s1 + $0x40] sm:$0xff]   ;;  %v552_v16 = vand.u32 %v1114_v14, %v550_v15  ;;  %v1123_v20 = vld [vmem:[%s1813_s0 + $0x114] ss:$8 sps:$4 sm:$0xff]   ;;  %v1125_v21 = vld [vmem:[%s1813_s0 + $0x10] ss:$8 sps:$4 sm:$0xff]  }
   0x6   :  { %557 = vmatpush1.bf16.msra.mxu0 %v1106_v2  ;;  %1094 = vmatpush1.bf16.msra.mxu1 %v1106_v2  ;;  %v1115_v17 = vld [vmem:[%s1813_s0] ss:$8 sps:$4 sm:$0xff]   ;;  %v1126_v22 = vld [vmem:[%s1813_s0 + $0x110] ss:$8 sps:$4 sm:$0xff]   ;;  %v1127_v23 = vld [vmem:[%s1813_s0 + $0x24] ss:$8 sps:$4 sm:$0xff]  }
   0x7   :  { %558 = vmatprep.subr.bf16.mxu0 %v1211_v0  ;;  %1085 = vmatprep.subr.bf16.mxu1 %v1211_v0  ;;  %v1118_v18 = vld [vmem:[%s1813_s0 + $0x100] ss:$8 sps:$4 sm:$0xff]   ;;  %v1129_v24 = vld [vmem:[%s1813_s0 + $0x124] ss:$8 sps:$4 sm:$0xff]   ;;  %v1133_v27 = vld [vmem:[%s1813_s0 + $0x34] ss:$8 sps:$4 sm:$0xff]  }
   0x8   :  { %v1131_v25 = vld [vmem:[%s1813_s0 + $0x20] ss:$8 sps:$4 sm:$0xff]   ;;  %v1135_v28 = vld [vmem:[%s1813_s0 + $0x134] ss:$8 sps:$4 sm:$0xff]   ;;  %v1137_v29 = vld [vmem:[%s1813_s0 + $0x30] ss:$8 sps:$4 sm:$0xff]  }
   0x9   :  { %v1132_v26 = vld [vmem:[%s1813_s0 + $0x120] ss:$8 sps:$4 sm:$0xff]   ;;  %v1138_v30 = vld [vmem:[%s1813_s0 + $0x130] ss:$8 sps:$4 sm:$0xff]   ;;  %v1139_v31 = vld [vmem:[%s1813_s0 + $0x44] ss:$8 sps:$4 sm:$0xff]  }
   0xa   :  { %559 = vmatpush1.bf16.msra.mxu0 %v1107_v3  ;;  %1095 = vmatpush1.bf16.msra.mxu1 %v1107_v3  ;;  %v1141_v32 = vld [vmem:[%s1813_s0 + $0x144] ss:$8 sps:$4 sm:$0xff]   ;;  %v1143_v33 = vld [vmem:[%s1813_s0 + $0x40] ss:$8 sps:$4 sm:$0xff]   ;;  %v1145_v35 = vld [vmem:[%s1813_s0 + $0x54] ss:$8 sps:$4 sm:$0xff]  }
   0xb   :  { %560 = vmatprep.subr.bf16.mxu0 %v1211_v0  ;;  %1086 = vmatprep.subr.bf16.mxu1 %v1211_v0  ;;  %v1144_v34 = vld [vmem:[%s1813_s0 + $0x140] ss:$8 sps:$4 sm:$0xff]   ;;  %v1147_v36 = vld [vmem:[%s1813_s0 + $0x154] ss:$8 sps:$4 sm:$0xff]   ;;  %v1149_v37 = vld [vmem:[%s1813_s0 + $0x50] ss:$8 sps:$4 sm:$0xff]  }
   0xc   :  { %v1150_v38 = vld [vmem:[%s1813_s0 + $0x150] ss:$8 sps:$4 sm:$0xff]   ;;  %v1151_v39 = vld [vmem:[%s1813_s0 + $0x64] ss:$8 sps:$4 sm:$0xff]   ;;  %v1155_v41 = vld [vmem:[%s1813_s0 + $0x60] ss:$8 sps:$4 sm:$0xff]  }
   0xd   :  { %v1153_v40 = vld [vmem:[%s1813_s0 + $0x164] ss:$8 sps:$4 sm:$0xff]   ;;  %v1156_v42 = vld [vmem:[%s1813_s0 + $0x160] ss:$8 sps:$4 sm:$0xff]   ;;  %v1157_v43 = vld [vmem:[%s1813_s0 + $0x74] ss:$8 sps:$4 sm:$0xff]  }
   0xe   :  { %561 = vmatpush1.bf16.msra.mxu0 %v1108_v4  ;;  %1096 = vmatpush1.bf16.msra.mxu1 %v1108_v4  ;;  %v1159_v44 = vld [vmem:[%s1813_s0 + $0x174] ss:$8 sps:$4 sm:$0xff]   ;;  %v1161_v45 = vld [vmem:[%s1813_s0 + $0x70] ss:$8 sps:$4 sm:$0xff]   ;;  %v1163_v47 = vld [vmem:[%s1813_s0 + $0x84] ss:$8 sps:$4 sm:$0xff]  }
   0xf   :  { %562 = vmatprep.subr.bf16.mxu0 %v1211_v0  ;;  %1087 = vmatprep.subr.bf16.mxu1 %v1211_v0  ;;  %v1162_v46 = vld [vmem:[%s1813_s0 + $0x170] ss:$8 sps:$4 sm:$0xff]   ;;  %v1165_v48 = vld [vmem:[%s1813_s0 + $0x184] ss:$8 sps:$4 sm:$0xff]   ;;  %v1167_v49 = vld [vmem:[%s1813_s0 + $0x80] ss:$8 sps:$4 sm:$0xff]  }
  0x10   :  { %v1168_v50 = vld [vmem:[%s1813_s0 + $0x180] ss:$8 sps:$4 sm:$0xff]   ;;  %v1169_v51 = vld [vmem:[%s1813_s0 + $0x94] ss:$8 sps:$4 sm:$0xff]   ;;  %v1173_v53 = vld [vmem:[%s1813_s0 + $0x90] ss:$8 sps:$4 sm:$0xff]  }
  0x11   :  { %v1171_v52 = vld [vmem:[%s1813_s0 + $0x194] ss:$8 sps:$4 sm:$0xff]   ;;  %v1174_v54 = vld [vmem:[%s1813_s0 + $0x190] ss:$8 sps:$4 sm:$0xff]   ;;  %v1175_v55 = vld [vmem:[%s1813_s0 + $0xa4] ss:$8 sps:$4 sm:$0xff]  }
  0x12   :  { %563 = vmatpush1.bf16.msra.mxu0 %v1109_v7  ;;  %1097 = vmatpush1.bf16.msra.mxu1 %v1109_v7  ;;  %v1177_v56 = vld [vmem:[%s1813_s0 + $0x1a4] ss:$8 sps:$4 sm:$0xff]   ;;  %v1179_v57 = vld [vmem:[%s1813_s0 + $0xa0] ss:$8 sps:$4 sm:$0xff]   ;;  %v1181_v59 = vld [vmem:[%s1813_s0 + $0xb4] ss:$8 sps:$4 sm:$0xff]  }
  0x13   :  { %564 = vmatprep.subr.bf16.mxu0 %v1211_v0  ;;  %1088 = vmatprep.subr.bf16.mxu1 %v1211_v0  ;;  %v1180_v58 = vld [vmem:[%s1813_s0 + $0x1a0] ss:$8 sps:$4 sm:$0xff]   ;;  %v1183_v60 = vld [vmem:[%s1813_s0 + $0x1b4] ss:$8 sps:$4 sm:$0xff]   ;;  %v1185_v61 = vld [vmem:[%s1813_s0 + $0xb0] ss:$8 sps:$4 sm:$0xff]  }
  0x14   :  { %v1186_v62 = vld [vmem:[%s1813_s0 + $0x1b0] ss:$8 sps:$4 sm:$0xff]   ;;  %v1187_v63 = vld [vmem:[%s1813_s0 + $0xc4] ss:$8 sps:$4 sm:$0xff]   ;;  %v1191_v1 = vld [vmem:[%s1813_s0 + $0xc0] ss:$8 sps:$4 sm:$0xff]  }
  0x15   :  { %v1192_v2 = vld [vmem:[%s1813_s0 + $0x1c0] ss:$8 sps:$4 sm:$0xff]   ;;  %v1193_v3 = vld [vmem:[%s1813_s0 + $0xd4] ss:$8 sps:$4 sm:$0xff]   ;;  %v1197_v5 = vld [vmem:[%s1813_s0 + $0xd0] ss:$8 sps:$4 sm:$0xff]  }
  0x16   :  { %565 = vmatpush1.bf16.msra.mxu0 %v1110_v8  ;;  %1098 = vmatpush1.bf16.msra.mxu1 %v1110_v8  ;;  %v1195_v4 = vld [vmem:[%s1813_s0 + $0x1d4] ss:$8 sps:$4 sm:$0xff]   ;;  %v1198_v6 = vld [vmem:[%s1813_s0 + $0x1d0] ss:$8 sps:$4 sm:$0xff]   ;;  %v1199_v7 = vld [vmem:[%s1813_s0 + $0xe4] ss:$8 sps:$4 sm:$0xff]  }
  0x17   :  { %566 = vmatprep.subr.bf16.mxu0 %v1211_v0  ;;  %1089 = vmatprep.subr.bf16.mxu1 %v1211_v0  ;;  %v1201_v8 = vld [vmem:[%s1813_s0 + $0x1e4] ss:$8 sps:$4 sm:$0xff]   ;;  %v1205_v11 = vld [vmem:[%s1813_s0 + $0xf4] ss:$8 sps:$4 sm:$0xff]   ;;  %v1210_v14 = vld [vmem:[%s1813_s0 + $0x1f0] ss:$8 sps:$4 sm:$0xff]  }
  0x18   :  { %v1207_v12 = vld [vmem:[%s1813_s0 + $0x1f4] ss:$8 sps:$4 sm:$0xff]   ;;  %v1490_v15 = vld [vmem:[%s1814_s2] ss:$0 sm:$0xff] }
  0x1a   :  { %567 = vmatpush1.bf16.msra.mxu0 %v1111_v9  ;;  %1099 = vmatpush1.bf16.msra.mxu1 %v1111_v9  ;;  %v1203_v9 = vld [vmem:[%s1813_s0 + $0xe0] ss:$8 sps:$4 sm:$0xff]  }
  0x1b   :  { %568 = vmatprep.subr.bf16.mxu0 %v1211_v0  ;;  %1090 = vmatprep.subr.bf16.mxu1 %v1211_v0 }
  0x1e   :  { %569 = vmatpush1.bf16.msra.mxu0 %v1112_v10  ;;  %1100 = vmatpush1.bf16.msra.mxu1 %v1112_v10  ;;  %v1204_v10 = vld [vmem:[%s1813_s0 + $0x1e0] ss:$8 sps:$4 sm:$0xff]  }
  0x1f   :  { %570 = vmatprep.subr.bf16.mxu0 %v1211_v0  ;;  %1091 = vmatprep.subr.bf16.mxu1 %v1211_v0 }
  0x22   :  { %571 = vmatpush1.bf16.msra.mxu0 %v1113_v13  ;;  %1101 = vmatpush1.bf16.msra.mxu1 %v1113_v13  ;;  %v1209_v13 = vld [vmem:[%s1813_s0 + $0xf0] ss:$8 sps:$4 sm:$0xff]  }
  0x23   :  { %572 = vmatprep.subr.bf16.mxu0 %v1211_v0  ;;  %1092 = vmatprep.subr.bf16.mxu1 %v1211_v0  ;;  %v1189_v0 = vld [vmem:[%s1813_s0 + $0x1c4] ss:$8 sps:$4 sm:$0xff]  }
  0x26   :  { %573 = vmatpush1.bf16.msra.mxu0 %v552_v16  ;;  %1102 = vmatpush1.bf16.msra.mxu1 %v552_v16 }
  0x29   :  { %587 = vmatmul.mubr.bf16.vlgmr.msra.gmra.mrb[0].mxu0 %v1115_v17  ;;  %715 = vmatmul.mubr.bf16.vlgmr.msra.gmra.mrb[0].mxu1 %v1118_v18 }
  0x2a   :  { %1052 = vmatprep.mubr.msk.bf16.mxu0 %vm450_vm0, %v1121_v19  ;;  %1068 = vmatprep.mubr.msk.bf16.mxu1 %vm450_vm0, %v1123_v20 }
  0x31   :  { %595 = vmatmul.mubr.bf16.gmra.mrb[4].mxu0 %v1125_v21  ;;  %723 = vmatmul.mubr.bf16.gmra.mrb[4].mxu1 %v1126_v22 }
  0x32   :  { %1053 = vmatprep.mubr.msk.bf16.mxu0 %vm450_vm0, %v1127_v23  ;;  %1069 = vmatprep.mubr.msk.bf16.mxu1 %vm450_vm0, %v1129_v24 }
  0x39   :  { %603 = vmatmul.mubr.bf16.gmra.mrb[8].mxu0 %v1131_v25  ;;  %731 = vmatmul.mubr.bf16.gmra.mrb[8].mxu1 %v1132_v26 }
  0x3a   :  { %1054 = vmatprep.mubr.msk.bf16.mxu0 %vm450_vm0, %v1133_v27  ;;  %1070 = vmatprep.mubr.msk.bf16.mxu1 %vm450_vm0, %v1135_v28 }
  0x41   :  { %611 = vmatmul.mubr.bf16.gmra.mrb[12].mxu0 %v1137_v29  ;;  %739 = vmatmul.mubr.bf16.gmra.mrb[12].mxu1 %v1138_v30 }
  0x42   :  { %1055 = vmatprep.mubr.msk.bf16.mxu0 %vm450_vm0, %v1139_v31  ;;  %1071 = vmatprep.mubr.msk.bf16.mxu1 %vm450_vm0, %v1141_v32 }
  0x49   :  { %619 = vmatmul.mubr.bf16.gmra.mrb[16].mxu0 %v1143_v33  ;;  %747 = vmatmul.mubr.bf16.gmra.mrb[16].mxu1 %v1144_v34 }
  0x4a   :  { %1056 = vmatprep.mubr.msk.bf16.mxu0 %vm450_vm0, %v1145_v35  ;;  %1072 = vmatprep.mubr.msk.bf16.mxu1 %vm450_vm0, %v1147_v36 }
  0x51   :  { %627 = vmatmul.mubr.bf16.gmra.mrb[20].mxu0 %v1149_v37  ;;  %755 = vmatmul.mubr.bf16.gmra.mrb[20].mxu1 %v1150_v38 }
  0x52   :  { %1057 = vmatprep.mubr.msk.bf16.mxu0 %vm450_vm0, %v1151_v39  ;;  %1073 = vmatprep.mubr.msk.bf16.mxu1 %vm450_vm0, %v1153_v40 }
  0x59   :  { %635 = vmatmul.mubr.bf16.gmra.mrb[24].mxu0 %v1155_v41  ;;  %763 = vmatmul.mubr.bf16.gmra.mrb[24].mxu1 %v1156_v42 }
  0x5a   :  { %1058 = vmatprep.mubr.msk.bf16.mxu0 %vm450_vm0, %v1157_v43  ;;  %1074 = vmatprep.mubr.msk.bf16.mxu1 %vm450_vm0, %v1159_v44 }
  0x61   :  { %643 = vmatmul.mubr.bf16.gmra.mrb[28].mxu0 %v1161_v45  ;;  %771 = vmatmul.mubr.bf16.gmra.mrb[28].mxu1 %v1162_v46 }
  0x62   :  { %1059 = vmatprep.mubr.msk.bf16.mxu0 %vm450_vm0, %v1163_v47  ;;  %1075 = vmatprep.mubr.msk.bf16.mxu1 %vm450_vm0, %v1165_v48 }
  0x69   :  { %651 = vmatmul.mubr.bf16.gmra.mrb[32].mxu0 %v1167_v49  ;;  %779 = vmatmul.mubr.bf16.gmra.mrb[32].mxu1 %v1168_v50 }
  0x6a   :  { %1060 = vmatprep.mubr.msk.bf16.mxu0 %vm450_vm0, %v1169_v51  ;;  %1076 = vmatprep.mubr.msk.bf16.mxu1 %vm450_vm0, %v1171_v52 }
  0x71   :  { %659 = vmatmul.mubr.bf16.gmra.mrb[36].mxu0 %v1173_v53  ;;  %787 = vmatmul.mubr.bf16.gmra.mrb[36].mxu1 %v1174_v54 }
  0x72   :  { %1061 = vmatprep.mubr.msk.bf16.mxu0 %vm450_vm0, %v1175_v55  ;;  %1077 = vmatprep.mubr.msk.bf16.mxu1 %vm450_vm0, %v1177_v56 }
  0x79   :  { %667 = vmatmul.mubr.bf16.gmra.mrb[40].mxu0 %v1179_v57  ;;  %795 = vmatmul.mubr.bf16.gmra.mrb[40].mxu1 %v1180_v58 }
  0x7a   :  { %1062 = vmatprep.mubr.msk.bf16.mxu0 %vm450_vm0, %v1181_v59  ;;  %1078 = vmatprep.mubr.msk.bf16.mxu1 %vm450_vm0, %v1183_v60 }
  0x81   :  { %675 = vmatmul.mubr.bf16.gmra.mrb[44].mxu0 %v1185_v61  ;;  %803 = vmatmul.mubr.bf16.gmra.mrb[44].mxu1 %v1186_v62 }
  0x82   :  { %1063 = vmatprep.mubr.msk.bf16.mxu0 %vm450_vm0, %v1187_v63  ;;  %1079 = vmatprep.mubr.msk.bf16.mxu1 %vm450_vm0, %v1189_v0 }
  0x89   :  { %683 = vmatmul.mubr.bf16.gmra.mrb[48].mxu0 %v1191_v1  ;;  %811 = vmatmul.mubr.bf16.gmra.mrb[48].mxu1 %v1192_v2 }
  0x8a   :  { %1064 = vmatprep.mubr.msk.bf16.mxu0 %vm450_vm0, %v1193_v3  ;;  %1080 = vmatprep.mubr.msk.bf16.mxu1 %vm450_vm0, %v1195_v4 }
  0x91   :  { %691 = vmatmul.mubr.bf16.gmra.mrb[52].mxu0 %v1197_v5  ;;  %819 = vmatmul.mubr.bf16.gmra.mrb[52].mxu1 %v1198_v6 }
  0x92   :  { %1065 = vmatprep.mubr.msk.bf16.mxu0 %vm450_vm0, %v1199_v7  ;;  %1081 = vmatprep.mubr.msk.bf16.mxu1 %vm450_vm0, %v1201_v8 }
  0x99   :  { %699 = vmatmul.mubr.bf16.gmra.mrb[56].mxu0 %v1203_v9  ;;  %827 = vmatmul.mubr.bf16.gmra.mrb[56].mxu1 %v1204_v10 }
  0x9a   :  { %1066 = vmatprep.mubr.msk.bf16.mxu0 %vm450_vm0, %v1205_v11  ;;  %1082 = vmatprep.mubr.msk.bf16.mxu1 %vm450_vm0, %v1207_v12 }
  0xa1   :  { %707 = vmatmul.mubr.bf16.gmra.mrb[60].mxu0 %v1209_v13  ;;  %835 = vmatmul.mubr.bf16.gmra.mrb[60].mxu1 %v1210_v14 }
  0xfc   :  { %v588_v16 = vpop.f32.mrb[0].mxu0  ;;  %v716_v17 = vpop.f32.mrb[0].mxu1 }
  0xfd   :  { %v589_v18 = vadd.f32 %v1490_v15, %v588_v16  ;;  %v717_v19 = vadd.f32 %v1490_v15, %v716_v17  ;;  %v590_v20 = vpop.f32.mrb[1].mxu0  ;;  %v718_v21 = vpop.f32.mrb[1].mxu1 }
  0xfe   :  { %v591_v22 = vpop.f32.mrb[2].mxu0  ;;  %v719_v23 = vpop.f32.mrb[2].mxu1 }
  0xff   :  { %v843_v24 = vmax.f32 %v589_v18, 0.0  ;;  %v875_v25 = vmax.f32 %v717_v19, 0.0  ;;  %v592_v26 = vadd.f32 %v1490_v15, %v591_v22  ;;  %v720_v27 = vadd.f32 %v1490_v15, %v719_v23  ;;  %v593_v28 = vpop.f32.mrb[3].mxu0  ;;  %v721_v29 = vpop.f32.mrb[3].mxu1 }
 0x101   :  { %908 = vst.msk [vmem:[%s1815_s3] sm:$0xff] %vm907_vm3, %v843_v24  ;;  %940 = vst.msk [vmem:[%s1815_s3 + $0x100] sm:$0xff] %vm907_vm3, %v875_v25  ;;  %v844_v30 = vmax.f32 %v592_v26, 0.0  ;;  %v876_v31 = vmax.f32 %v720_v27, 0.0 }
 0x103   :  { %909 = vst.msk [vmem:[%s1815_s3 + $0x8] sm:$0xff] %vm907_vm3, %v844_v30  ;;  %941 = vst.msk [vmem:[%s1815_s3 + $0x108] sm:$0xff] %vm907_vm3, %v876_v31 }
 0x104   :  { %v596_v32 = vpop.f32.mrb[4].mxu0  ;;  %v724_v33 = vpop.f32.mrb[4].mxu1 }
 0x105   :  { %v597_v34 = vadd.f32 %v1490_v15, %v596_v32  ;;  %v725_v35 = vadd.f32 %v1490_v15, %v724_v33  ;;  %v598_v36 = vpop.f32.mrb[5].mxu0  ;;  %v726_v37 = vpop.f32.mrb[5].mxu1 }
 0x106   :  { %v599_v38 = vpop.f32.mrb[6].mxu0  ;;  %v727_v39 = vpop.f32.mrb[6].mxu1 }
 0x107   :  { %v845_v40 = vmax.f32 %v597_v34, 0.0  ;;  %v877_v41 = vmax.f32 %v725_v35, 0.0  ;;  %v600_v42 = vadd.f32 %v1490_v15, %v599_v38  ;;  %v728_v43 = vadd.f32 %v1490_v15, %v727_v39  ;;  %v601_v44 = vpop.f32.mrb[7].mxu0  ;;  %v729_v45 = vpop.f32.mrb[7].mxu1 }
 0x109   :  { %910 = vst.msk [vmem:[%s1815_s3 + $0x10] sm:$0xff] %vm907_vm3, %v845_v40  ;;  %942 = vst.msk [vmem:[%s1815_s3 + $0x110] sm:$0xff] %vm907_vm3, %v877_v41  ;;  %v846_v46 = vmax.f32 %v600_v42, 0.0  ;;  %v878_v47 = vmax.f32 %v728_v43, 0.0 }
 0x10b   :  { %911 = vst.msk [vmem:[%s1815_s3 + $0x18] sm:$0xff] %vm907_vm3, %v846_v46  ;;  %943 = vst.msk [vmem:[%s1815_s3 + $0x118] sm:$0xff] %vm907_vm3, %v878_v47 }
 0x10c   :  { %v604_v48 = vpop.f32.mrb[8].mxu0  ;;  %v732_v49 = vpop.f32.mrb[8].mxu1 }
 0x10d   :  { %v605_v50 = vadd.f32 %v1490_v15, %v604_v48  ;;  %v733_v51 = vadd.f32 %v1490_v15, %v732_v49  ;;  %v606_v52 = vpop.f32.mrb[9].mxu0  ;;  %v734_v53 = vpop.f32.mrb[9].mxu1 }
 0x10e   :  { %v607_v54 = vpop.f32.mrb[10].mxu0  ;;  %v735_v55 = vpop.f32.mrb[10].mxu1 }
 0x10f   :  { %v847_v56 = vmax.f32 %v605_v50, 0.0  ;;  %v879_v57 = vmax.f32 %v733_v51, 0.0  ;;  %v608_v58 = vadd.f32 %v1490_v15, %v607_v54  ;;  %v736_v59 = vadd.f32 %v1490_v15, %v735_v55  ;;  %v609_v60 = vpop.f32.mrb[11].mxu0  ;;  %v737_v61 = vpop.f32.mrb[11].mxu1 }
 0x111   :  { %912 = vst.msk [vmem:[%s1815_s3 + $0x20] sm:$0xff] %vm907_vm3, %v847_v56  ;;  %944 = vst.msk [vmem:[%s1815_s3 + $0x120] sm:$0xff] %vm907_vm3, %v879_v57  ;;  %v848_v62 = vmax.f32 %v608_v58, 0.0  ;;  %v880_v63 = vmax.f32 %v736_v59, 0.0 }
 0x113   :  { %913 = vst.msk [vmem:[%s1815_s3 + $0x28] sm:$0xff] %vm907_vm3, %v848_v62  ;;  %945 = vst.msk [vmem:[%s1815_s3 + $0x128] sm:$0xff] %vm907_vm3, %v880_v63 }
 0x114   :  { %v612_v0 = vpop.f32.mrb[12].mxu0  ;;  %v740_v1 = vpop.f32.mrb[12].mxu1 }
 0x115   :  { %v613_v2 = vadd.f32 %v1490_v15, %v612_v0  ;;  %v741_v3 = vadd.f32 %v1490_v15, %v740_v1  ;;  %v614_v4 = vpop.f32.mrb[13].mxu0  ;;  %v742_v5 = vpop.f32.mrb[13].mxu1 }
 0x116   :  { %v615_v6 = vpop.f32.mrb[14].mxu0  ;;  %v743_v7 = vpop.f32.mrb[14].mxu1 }
 0x117   :  { %v849_v8 = vmax.f32 %v613_v2, 0.0  ;;  %v881_v9 = vmax.f32 %v741_v3, 0.0  ;;  %v616_v10 = vadd.f32 %v1490_v15, %v615_v6  ;;  %v744_v11 = vadd.f32 %v1490_v15, %v743_v7  ;;  %v617_v12 = vpop.f32.mrb[15].mxu0  ;;  %v745_v13 = vpop.f32.mrb[15].mxu1 }
 0x119   :  { %914 = vst.msk [vmem:[%s1815_s3 + $0x30] sm:$0xff] %vm907_vm3, %v849_v8  ;;  %946 = vst.msk [vmem:[%s1815_s3 + $0x130] sm:$0xff] %vm907_vm3, %v881_v9  ;;  %v850_v14 = vmax.f32 %v616_v10, 0.0  ;;  %v882_v16 = vmax.f32 %v744_v11, 0.0 }
 0x11b   :  { %915 = vst.msk [vmem:[%s1815_s3 + $0x38] sm:$0xff] %vm907_vm3, %v850_v14  ;;  %947 = vst.msk [vmem:[%s1815_s3 + $0x138] sm:$0xff] %vm907_vm3, %v882_v16 }
 0x11c   :  { %v620_v17 = vpop.f32.mrb[16].mxu0  ;;  %v748_v18 = vpop.f32.mrb[16].mxu1 }
 0x11d   :  { %v621_v19 = vadd.f32 %v1490_v15, %v620_v17  ;;  %v749_v20 = vadd.f32 %v1490_v15, %v748_v18  ;;  %v622_v21 = vpop.f32.mrb[17].mxu0  ;;  %v750_v22 = vpop.f32.mrb[17].mxu1 }
 0x11e   :  { %v623_v23 = vpop.f32.mrb[18].mxu0  ;;  %v751_v24 = vpop.f32.mrb[18].mxu1 }
 0x11f   :  { %v851_v25 = vmax.f32 %v621_v19, 0.0  ;;  %v883_v26 = vmax.f32 %v749_v20, 0.0  ;;  %v624_v27 = vadd.f32 %v1490_v15, %v623_v23  ;;  %v752_v28 = vadd.f32 %v1490_v15, %v751_v24  ;;  %v625_v29 = vpop.f32.mrb[19].mxu0  ;;  %v753_v30 = vpop.f32.mrb[19].mxu1 }
 0x121   :  { %916 = vst.msk [vmem:[%s1815_s3 + $0x40] sm:$0xff] %vm907_vm3, %v851_v25  ;;  %948 = vst.msk [vmem:[%s1815_s3 + $0x140] sm:$0xff] %vm907_vm3, %v883_v26  ;;  %v852_v31 = vmax.f32 %v624_v27, 0.0  ;;  %v884_v32 = vmax.f32 %v752_v28, 0.0 }
 0x123   :  { %917 = vst.msk [vmem:[%s1815_s3 + $0x48] sm:$0xff] %vm907_vm3, %v852_v31  ;;  %949 = vst.msk [vmem:[%s1815_s3 + $0x148] sm:$0xff] %vm907_vm3, %v884_v32 }
 0x124   :  { %v628_v33 = vpop.f32.mrb[20].mxu0  ;;  %v756_v34 = vpop.f32.mrb[20].mxu1 }
 0x125   :  { %v629_v35 = vadd.f32 %v1490_v15, %v628_v33  ;;  %v757_v36 = vadd.f32 %v1490_v15, %v756_v34  ;;  %v630_v37 = vpop.f32.mrb[21].mxu0  ;;  %v758_v38 = vpop.f32.mrb[21].mxu1 }
 0x126   :  { %v631_v39 = vpop.f32.mrb[22].mxu0  ;;  %v759_v40 = vpop.f32.mrb[22].mxu1 }
 0x127   :  { %v853_v41 = vmax.f32 %v629_v35, 0.0  ;;  %v885_v42 = vmax.f32 %v757_v36, 0.0  ;;  %v632_v43 = vadd.f32 %v1490_v15, %v631_v39  ;;  %v760_v44 = vadd.f32 %v1490_v15, %v759_v40  ;;  %v633_v45 = vpop.f32.mrb[23].mxu0  ;;  %v761_v46 = vpop.f32.mrb[23].mxu1 }
 0x129   :  { %918 = vst.msk [vmem:[%s1815_s3 + $0x50] sm:$0xff] %vm907_vm3, %v853_v41  ;;  %950 = vst.msk [vmem:[%s1815_s3 + $0x150] sm:$0xff] %vm907_vm3, %v885_v42  ;;  %v854_v47 = vmax.f32 %v632_v43, 0.0  ;;  %v886_v48 = vmax.f32 %v760_v44, 0.0 }
 0x12b   :  { %919 = vst.msk [vmem:[%s1815_s3 + $0x58] sm:$0xff] %vm907_vm3, %v854_v47  ;;  %951 = vst.msk [vmem:[%s1815_s3 + $0x158] sm:$0xff] %vm907_vm3, %v886_v48 }
 0x12c   :  { %v636_v49 = vpop.f32.mrb[24].mxu0  ;;  %v764_v50 = vpop.f32.mrb[24].mxu1 }
 0x12d   :  { %v637_v51 = vadd.f32 %v1490_v15, %v636_v49  ;;  %v765_v52 = vadd.f32 %v1490_v15, %v764_v50  ;;  %v638_v53 = vpop.f32.mrb[25].mxu0  ;;  %v766_v54 = vpop.f32.mrb[25].mxu1 }
 0x12e   :  { %v639_v55 = vpop.f32.mrb[26].mxu0  ;;  %v767_v56 = vpop.f32.mrb[26].mxu1 }
 0x12f   :  { %v855_v57 = vmax.f32 %v637_v51, 0.0  ;;  %v887_v58 = vmax.f32 %v765_v52, 0.0  ;;  %v640_v59 = vadd.f32 %v1490_v15, %v639_v55  ;;  %v768_v60 = vadd.f32 %v1490_v15, %v767_v56  ;;  %v641_v61 = vpop.f32.mrb[27].mxu0  ;;  %v769_v62 = vpop.f32.mrb[27].mxu1 }
 0x131   :  { %920 = vst.msk [vmem:[%s1815_s3 + $0x60] sm:$0xff] %vm907_vm3, %v855_v57  ;;  %952 = vst.msk [vmem:[%s1815_s3 + $0x160] sm:$0xff] %vm907_vm3, %v887_v58  ;;  %v856_v63 = vmax.f32 %v640_v59, 0.0  ;;  %v888_v0 = vmax.f32 %v768_v60, 0.0 }
 0x133   :  { %921 = vst.msk [vmem:[%s1815_s3 + $0x68] sm:$0xff] %vm907_vm3, %v856_v63  ;;  %953 = vst.msk [vmem:[%s1815_s3 + $0x168] sm:$0xff] %vm907_vm3, %v888_v0 }
 0x134   :  { %v644_v1 = vpop.f32.mrb[28].mxu0  ;;  %v772_v2 = vpop.f32.mrb[28].mxu1 }
 0x135   :  { %v645_v3 = vadd.f32 %v1490_v15, %v644_v1  ;;  %v773_v4 = vadd.f32 %v1490_v15, %v772_v2  ;;  %v646_v5 = vpop.f32.mrb[29].mxu0  ;;  %v774_v6 = vpop.f32.mrb[29].mxu1 }
 0x136   :  { %v647_v7 = vpop.f32.mrb[30].mxu0  ;;  %v775_v8 = vpop.f32.mrb[30].mxu1 }
 0x137   :  { %v857_v9 = vmax.f32 %v645_v3, 0.0  ;;  %v889_v10 = vmax.f32 %v773_v4, 0.0  ;;  %v648_v11 = vadd.f32 %v1490_v15, %v647_v7  ;;  %v776_v12 = vadd.f32 %v1490_v15, %v775_v8  ;;  %v649_v13 = vpop.f32.mrb[31].mxu0  ;;  %v777_v14 = vpop.f32.mrb[31].mxu1 }
 0x139   :  { %922 = vst.msk [vmem:[%s1815_s3 + $0x70] sm:$0xff] %vm907_vm3, %v857_v9  ;;  %954 = vst.msk [vmem:[%s1815_s3 + $0x170] sm:$0xff] %vm907_vm3, %v889_v10  ;;  %v858_v16 = vmax.f32 %v648_v11, 0.0  ;;  %v890_v17 = vmax.f32 %v776_v12, 0.0 }
 0x13b   :  { %923 = vst.msk [vmem:[%s1815_s3 + $0x78] sm:$0xff] %vm907_vm3, %v858_v16  ;;  %955 = vst.msk [vmem:[%s1815_s3 + $0x178] sm:$0xff] %vm907_vm3, %v890_v17 }
 0x13c   :  { %v652_v18 = vpop.f32.mrb[32].mxu0  ;;  %v780_v19 = vpop.f32.mrb[32].mxu1 }
 0x13d   :  { %v653_v20 = vadd.f32 %v1490_v15, %v652_v18  ;;  %v781_v21 = vadd.f32 %v1490_v15, %v780_v19  ;;  %v654_v22 = vpop.f32.mrb[33].mxu0  ;;  %v782_v23 = vpop.f32.mrb[33].mxu1 }
 0x13e   :  { %v655_v24 = vpop.f32.mrb[34].mxu0  ;;  %v783_v25 = vpop.f32.mrb[34].mxu1 }
 0x13f   :  { %v859_v26 = vmax.f32 %v653_v20, 0.0  ;;  %v891_v27 = vmax.f32 %v781_v21, 0.0  ;;  %v656_v28 = vadd.f32 %v1490_v15, %v655_v24  ;;  %v784_v29 = vadd.f32 %v1490_v15, %v783_v25  ;;  %v657_v30 = vpop.f32.mrb[35].mxu0  ;;  %v785_v31 = vpop.f32.mrb[35].mxu1 }
 0x141   :  { %924 = vst.msk [vmem:[%s1815_s3 + $0x80] sm:$0xff] %vm907_vm3, %v859_v26  ;;  %956 = vst.msk [vmem:[%s1815_s3 + $0x180] sm:$0xff] %vm907_vm3, %v891_v27  ;;  %v860_v32 = vmax.f32 %v656_v28, 0.0  ;;  %v892_v33 = vmax.f32 %v784_v29, 0.0 }
 0x143   :  { %925 = vst.msk [vmem:[%s1815_s3 + $0x88] sm:$0xff] %vm907_vm3, %v860_v32  ;;  %957 = vst.msk [vmem:[%s1815_s3 + $0x188] sm:$0xff] %vm907_vm3, %v892_v33 }
 0x144   :  { %v660_v34 = vpop.f32.mrb[36].mxu0  ;;  %v788_v35 = vpop.f32.mrb[36].mxu1 }
 0x145   :  { %v661_v36 = vadd.f32 %v1490_v15, %v660_v34  ;;  %v789_v37 = vadd.f32 %v1490_v15, %v788_v35  ;;  %v662_v38 = vpop.f32.mrb[37].mxu0  ;;  %v790_v39 = vpop.f32.mrb[37].mxu1 }
 0x146   :  { %v663_v40 = vpop.f32.mrb[38].mxu0  ;;  %v791_v41 = vpop.f32.mrb[38].mxu1 }
 0x147   :  { %v861_v42 = vmax.f32 %v661_v36, 0.0  ;;  %v893_v43 = vmax.f32 %v789_v37, 0.0  ;;  %v664_v44 = vadd.f32 %v1490_v15, %v663_v40  ;;  %v792_v45 = vadd.f32 %v1490_v15, %v791_v41  ;;  %v665_v46 = vpop.f32.mrb[39].mxu0  ;;  %v793_v47 = vpop.f32.mrb[39].mxu1 }
 0x149   :  { %926 = vst.msk [vmem:[%s1815_s3 + $0x90] sm:$0xff] %vm907_vm3, %v861_v42  ;;  %958 = vst.msk [vmem:[%s1815_s3 + $0x190] sm:$0xff] %vm907_vm3, %v893_v43  ;;  %v862_v48 = vmax.f32 %v664_v44, 0.0  ;;  %v894_v49 = vmax.f32 %v792_v45, 0.0 }
 0x14b   :  { %927 = vst.msk [vmem:[%s1815_s3 + $0x98] sm:$0xff] %vm907_vm3, %v862_v48  ;;  %959 = vst.msk [vmem:[%s1815_s3 + $0x198] sm:$0xff] %vm907_vm3, %v894_v49 }
 0x14c   :  { %v668_v50 = vpop.f32.mrb[40].mxu0  ;;  %v796_v51 = vpop.f32.mrb[40].mxu1 }
 0x14d   :  { %v669_v52 = vadd.f32 %v1490_v15, %v668_v50  ;;  %v797_v53 = vadd.f32 %v1490_v15, %v796_v51  ;;  %v670_v54 = vpop.f32.mrb[41].mxu0  ;;  %v798_v55 = vpop.f32.mrb[41].mxu1 }
 0x14e   :  { %v671_v56 = vpop.f32.mrb[42].mxu0  ;;  %v799_v57 = vpop.f32.mrb[42].mxu1 }
 0x14f   :  { %v863_v58 = vmax.f32 %v669_v52, 0.0  ;;  %v895_v59 = vmax.f32 %v797_v53, 0.0  ;;  %v672_v60 = vadd.f32 %v1490_v15, %v671_v56  ;;  %v800_v61 = vadd.f32 %v1490_v15, %v799_v57  ;;  %v673_v62 = vpop.f32.mrb[43].mxu0  ;;  %v801_v63 = vpop.f32.mrb[43].mxu1 }
 0x151   :  { %928 = vst.msk [vmem:[%s1815_s3 + $0xa0] sm:$0xff] %vm907_vm3, %v863_v58  ;;  %960 = vst.msk [vmem:[%s1815_s3 + $0x1a0] sm:$0xff] %vm907_vm3, %v895_v59  ;;  %v864_v0 = vmax.f32 %v672_v60, 0.0  ;;  %v896_v1 = vmax.f32 %v800_v61, 0.0 }
 0x153   :  { %929 = vst.msk [vmem:[%s1815_s3 + $0xa8] sm:$0xff] %vm907_vm3, %v864_v0  ;;  %961 = vst.msk [vmem:[%s1815_s3 + $0x1a8] sm:$0xff] %vm907_vm3, %v896_v1 }
 0x154   :  { %v676_v2 = vpop.f32.mrb[44].mxu0  ;;  %v804_v3 = vpop.f32.mrb[44].mxu1 }
 0x155   :  { %v677_v4 = vadd.f32 %v1490_v15, %v676_v2  ;;  %v805_v5 = vadd.f32 %v1490_v15, %v804_v3  ;;  %v678_v6 = vpop.f32.mrb[45].mxu0  ;;  %v806_v7 = vpop.f32.mrb[45].mxu1 }
 0x156   :  { %v679_v8 = vpop.f32.mrb[46].mxu0  ;;  %v807_v9 = vpop.f32.mrb[46].mxu1 }
 0x157   :  { %v865_v10 = vmax.f32 %v677_v4, 0.0  ;;  %v897_v11 = vmax.f32 %v805_v5, 0.0  ;;  %v680_v12 = vadd.f32 %v1490_v15, %v679_v8  ;;  %v808_v13 = vadd.f32 %v1490_v15, %v807_v9  ;;  %v681_v14 = vpop.f32.mrb[47].mxu0  ;;  %v809_v16 = vpop.f32.mrb[47].mxu1 }
 0x159   :  { %930 = vst.msk [vmem:[%s1815_s3 + $0xb0] sm:$0xff] %vm907_vm3, %v865_v10  ;;  %962 = vst.msk [vmem:[%s1815_s3 + $0x1b0] sm:$0xff] %vm907_vm3, %v897_v11  ;;  %v866_v17 = vmax.f32 %v680_v12, 0.0  ;;  %v898_v18 = vmax.f32 %v808_v13, 0.0 }
 0x15b   :  { %931 = vst.msk [vmem:[%s1815_s3 + $0xb8] sm:$0xff] %vm907_vm3, %v866_v17  ;;  %963 = vst.msk [vmem:[%s1815_s3 + $0x1b8] sm:$0xff] %vm907_vm3, %v898_v18 }
 0x15c   :  { %v684_v19 = vpop.f32.mrb[48].mxu0  ;;  %v812_v20 = vpop.f32.mrb[48].mxu1 }
 0x15d   :  { %v685_v21 = vadd.f32 %v1490_v15, %v684_v19  ;;  %v813_v22 = vadd.f32 %v1490_v15, %v812_v20  ;;  %v686_v23 = vpop.f32.mrb[49].mxu0  ;;  %v814_v24 = vpop.f32.mrb[49].mxu1 }
 0x15e   :  { %v687_v25 = vpop.f32.mrb[50].mxu0  ;;  %v815_v26 = vpop.f32.mrb[50].mxu1 }
 0x15f   :  { %v867_v27 = vmax.f32 %v685_v21, 0.0  ;;  %v899_v28 = vmax.f32 %v813_v22, 0.0  ;;  %v688_v29 = vadd.f32 %v1490_v15, %v687_v25  ;;  %v816_v30 = vadd.f32 %v1490_v15, %v815_v26  ;;  %v689_v31 = vpop.f32.mrb[51].mxu0  ;;  %v817_v32 = vpop.f32.mrb[51].mxu1 }
 0x161   :  { %932 = vst.msk [vmem:[%s1815_s3 + $0xc0] sm:$0xff] %vm907_vm3, %v867_v27  ;;  %964 = vst.msk [vmem:[%s1815_s3 + $0x1c0] sm:$0xff] %vm907_vm3, %v899_v28  ;;  %v868_v33 = vmax.f32 %v688_v29, 0.0  ;;  %v900_v34 = vmax.f32 %v816_v30, 0.0 }
 0x163   :  { %933 = vst.msk [vmem:[%s1815_s3 + $0xc8] sm:$0xff] %vm907_vm3, %v868_v33  ;;  %965 = vst.msk [vmem:[%s1815_s3 + $0x1c8] sm:$0xff] %vm907_vm3, %v900_v34 }
 0x164   :  { %v692_v35 = vpop.f32.mrb[52].mxu0  ;;  %v820_v36 = vpop.f32.mrb[52].mxu1 }
 0x165   :  { %v693_v37 = vadd.f32 %v1490_v15, %v692_v35  ;;  %v821_v38 = vadd.f32 %v1490_v15, %v820_v36  ;;  %v694_v39 = vpop.f32.mrb[53].mxu0  ;;  %v822_v40 = vpop.f32.mrb[53].mxu1 }
 0x166   :  { %v695_v41 = vpop.f32.mrb[54].mxu0  ;;  %v823_v42 = vpop.f32.mrb[54].mxu1 }
 0x167   :  { %v869_v43 = vmax.f32 %v693_v37, 0.0  ;;  %v901_v44 = vmax.f32 %v821_v38, 0.0  ;;  %v696_v45 = vadd.f32 %v1490_v15, %v695_v41  ;;  %v824_v46 = vadd.f32 %v1490_v15, %v823_v42  ;;  %v697_v47 = vpop.f32.mrb[55].mxu0  ;;  %v825_v48 = vpop.f32.mrb[55].mxu1 }
 0x169   :  { %934 = vst.msk [vmem:[%s1815_s3 + $0xd0] sm:$0xff] %vm907_vm3, %v869_v43  ;;  %966 = vst.msk [vmem:[%s1815_s3 + $0x1d0] sm:$0xff] %vm907_vm3, %v901_v44  ;;  %v870_v49 = vmax.f32 %v696_v45, 0.0  ;;  %v902_v50 = vmax.f32 %v824_v46, 0.0 }
 0x16b   :  { %935 = vst.msk [vmem:[%s1815_s3 + $0xd8] sm:$0xff] %vm907_vm3, %v870_v49  ;;  %967 = vst.msk [vmem:[%s1815_s3 + $0x1d8] sm:$0xff] %vm907_vm3, %v902_v50 }
 0x16c   :  { %v700_v51 = vpop.f32.mrb[56].mxu0  ;;  %v828_v52 = vpop.f32.mrb[56].mxu1 }
 0x16d   :  { %v701_v53 = vadd.f32 %v1490_v15, %v700_v51  ;;  %v829_v54 = vadd.f32 %v1490_v15, %v828_v52  ;;  %v702_v55 = vpop.f32.mrb[57].mxu0  ;;  %v830_v56 = vpop.f32.mrb[57].mxu1 }
 0x16e   :  { %v703_v57 = vpop.f32.mrb[58].mxu0  ;;  %v831_v58 = vpop.f32.mrb[58].mxu1 }
 0x16f   :  { %v871_v59 = vmax.f32 %v701_v53, 0.0  ;;  %v903_v60 = vmax.f32 %v829_v54, 0.0  ;;  %v704_v61 = vadd.f32 %v1490_v15, %v703_v57  ;;  %v832_v62 = vadd.f32 %v1490_v15, %v831_v58  ;;  %v705_v63 = vpop.f32.mrb[59].mxu0  ;;  %v833_v0 = vpop.f32.mrb[59].mxu1 }
 0x171   :  { %936 = vst.msk [vmem:[%s1815_s3 + $0xe0] sm:$0xff] %vm907_vm3, %v871_v59  ;;  %968 = vst.msk [vmem:[%s1815_s3 + $0x1e0] sm:$0xff] %vm907_vm3, %v903_v60  ;;  %v872_v1 = vmax.f32 %v704_v61, 0.0  ;;  %v904_v2 = vmax.f32 %v832_v62, 0.0 }
 0x173   :  { %937 = vst.msk [vmem:[%s1815_s3 + $0xe8] sm:$0xff] %vm907_vm3, %v872_v1  ;;  %969 = vst.msk [vmem:[%s1815_s3 + $0x1e8] sm:$0xff] %vm907_vm3, %v904_v2 }
 0x174   :  { %v708_v3 = vpop.f32.mrb[60].mxu0  ;;  %v836_v4 = vpop.f32.mrb[60].mxu1 }
 0x175   :  { %v709_v5 = vadd.f32 %v1490_v15, %v708_v3  ;;  %v837_v6 = vadd.f32 %v1490_v15, %v836_v4  ;;  %v710_v7 = vpop.f32.mrb[61].mxu0  ;;  %v838_v8 = vpop.f32.mrb[61].mxu1 }
 0x176   :  { %v711_v9 = vpop.f32.mrb[62].mxu0  ;;  %v839_v10 = vpop.f32.mrb[62].mxu1 }
 0x177   :  { %v873_v11 = vmax.f32 %v709_v5, 0.0  ;;  %v905_v12 = vmax.f32 %v837_v6, 0.0  ;;  %v712_v13 = vadd.f32 %v1490_v15, %v711_v9  ;;  %v840_v14 = vadd.f32 %v1490_v15, %v839_v10  ;;  %v713_v16 = vpop.f32.mrb[63].mxu0  ;;  %v841_v17 = vpop.f32.mrb[63].mxu1 }
 0x179   :  { %938 = vst.msk [vmem:[%s1815_s3 + $0xf0] sm:$0xff] %vm907_vm3, %v873_v11  ;;  %970 = vst.msk [vmem:[%s1815_s3 + $0x1f0] sm:$0xff] %vm907_vm3, %v905_v12  ;;  %v874_v18 = vmax.f32 %v712_v13, 0.0  ;;  %v906_v19 = vmax.f32 %v840_v14, 0.0 }
 0x17b   :  { %939 = vst.msk [vmem:[%s1815_s3 + $0xf8] sm:$0xff] %vm907_vm3, %v874_v18  ;;  %971 = vst.msk [vmem:[%s1815_s3 + $0x1f8] sm:$0xff] %vm907_vm3, %v906_v19 }

</bundles_post_ra>
